<compile_context>
chip_gen: v5e
topology: v5e:2x2
jax: 0.10.0
libtpu: 0.0.40
codegen_flags: <defaults>
</compile_context>

<pallas_src>
import jax
import jax.numpy as jnp
from jax import lax
from jax.experimental import pallas as pl
from jax.experimental.pallas import tpu as pltpu

BN_EPS = 1e-5
_VMEM_LIMIT_BYTES = 32 * 1024 * 1024  # safe on v5e/v6e (128 MiB) and v7x (64 MiB)


def _pick_tn(n, cin, cout, budget_bytes=4 * 1024 * 1024):
    """Largest lane-dense tile of N that divides N and keeps tiles small."""
    for tn in (2048, 1024, 512, 256, 128):
        if n % tn == 0 and 4 * tn * (cin + cout) <= budget_bytes:
            return tn
    return n  # fall back to the whole (small / odd-sized) N axis


def _stats_kernel(x_ref, w_ref, b_ref, stats_ref):
    # x_ref: (Cin, TN)  w_ref: (Cout, Cin)  b_ref: (Cout, 1)  stats_ref: (Cout, 2)
    @pl.when(pl.program_id(1) == 0)
    def _():
        stats_ref[...] = jnp.zeros_like(stats_ref)

    # Conv1d(k=1) == W @ x on the MXU, f32 accumulation; no explicit upcasts.
    y = jnp.dot(w_ref[...], x_ref[...], preferred_element_type=jnp.float32)
    y = jnp.maximum(y + b_ref[...], 0.0)

    # Single-pass moment accumulation (sum / sum-of-squares), lane-axis reduce.
    stats_ref[:, 0:1] += jnp.sum(y, axis=1, keepdims=True)
    stats_ref[:, 1:2] += jnp.sum(y * y, axis=1, keepdims=True)


def _apply_kernel(x_ref, w_ref, b_ref, scale_ref, shift_ref, o_ref):
    # Recompute the cheap matmul, then fused ReLU + affine batch-norm.
    y = jnp.dot(w_ref[...], x_ref[...], preferred_element_type=jnp.float32)
    y = jnp.maximum(y + b_ref[...], 0.0)
    o_ref[...] = (y * scale_ref[...] + shift_ref[...]).astype(o_ref.dtype)


def shared_mlp(x, conv_w, conv_b, bn_gamma, bn_beta):
    """x: (B, Cin, N).  conv_w: (Cout, Cin, 1).  Returns (B, Cout, N)."""
    B, Cin, N = x.shape
    Cout = conv_w.shape[0]
    TN = _pick_tn(N, Cin, Cout)
    NT = N // TN

    w = conv_w[:, :, 0].astype(jnp.float32)             # (Cout, Cin) -- native layout
    b = conv_b.reshape(Cout, 1).astype(jnp.float32)

    x_spec = pl.BlockSpec((None, Cin, TN), lambda bi, ni: (bi, 0, ni))
    w_spec = pl.BlockSpec((Cout, Cin), lambda bi, ni: (0, 0))
    vec_spec = pl.BlockSpec((Cout, 1), lambda bi, ni: (0, 0))

    x_bytes = x.size * x.dtype.itemsize
    out_bytes = B * Cout * N * x.dtype.itemsize
    param_bytes = (w.size + 4 * Cout) * 4
    mm_flops = 2 * B * N * Cin * Cout

    # ---- Phase 1: per-batch partial BN statistics -------------------------
    stats = pl.pallas_call(
        _stats_kernel,
        out_shape=jax.ShapeDtypeStruct((B, Cout, 2), jnp.float32),
        grid=(B, NT),
        in_specs=[x_spec, w_spec, vec_spec],
        out_specs=pl.BlockSpec((None, Cout, 2), lambda bi, ni: (bi, 0, 0)),
        compiler_params=pltpu.CompilerParams(
            dimension_semantics=("parallel", "arbitrary"),
            vmem_limit_bytes=_VMEM_LIMIT_BYTES),
        cost_estimate=pl.CostEstimate(
            flops=mm_flops + 4 * B * N * Cout,
            transcendentals=0,
            bytes_accessed=x_bytes + param_bytes + B * Cout * 2 * 4),
    )(x, w, b)

    # ---- Tiny glue on (Cout,)-sized arrays: fold stats into scale/shift ----
    count = jnp.float32(B * N)
    ch_sum = jnp.sum(stats[:, :, 0], axis=0)
    ch_sumsq = jnp.sum(stats[:, :, 1], axis=0)
    mean = ch_sum / count
    var = jnp.maximum(ch_sumsq / count - mean * mean, 0.0)   # biased (training) var
    inv_std = lax.rsqrt(var + BN_EPS)
    g = bn_gamma.astype(jnp.float32)
    scale = (g * inv_std).reshape(Cout, 1)
    shift = (bn_beta.astype(jnp.float32) - g * inv_std * mean).reshape(Cout, 1)

    # ---- Phase 2: normalize (recompute matmul, write lane-dense output) ----
    out = pl.pallas_call(
        _apply_kernel,
        out_shape=jax.ShapeDtypeStruct((B, Cout, N), x.dtype),
        grid=(B, NT),
        in_specs=[x_spec, w_spec, vec_spec, vec_spec, vec_spec],
        out_specs=pl.BlockSpec((None, Cout, TN), lambda bi, ni: (bi, 0, ni)),
        compiler_params=pltpu.CompilerParams(
            dimension_semantics=("parallel", "parallel"),
            vmem_limit_bytes=_VMEM_LIMIT_BYTES),
        cost_estimate=pl.CostEstimate(
            flops=mm_flops + 3 * B * N * Cout,
            transcendentals=0,
            bytes_accessed=x_bytes + out_bytes + param_bytes),
    )(x, w, b, scale, shift)

    return out


def shared_mlp_reference(x, conv_w, conv_b, bn_gamma, bn_beta):
    """Plain-JAX reference mirroring PyTorch Conv1d(k=1)+ReLU+BatchNorm1d(train)."""
    y = jnp.einsum("bcn,oc->bon", x, conv_w[:, :, 0]) + conv_b[None, :, None]
    y = jnp.maximum(y, 0.0)
    mean = jnp.mean(y, axis=(0, 2), keepdims=True)
    var = jnp.mean((y - mean) ** 2, axis=(0, 2), keepdims=True)
    y = (y - mean) / jnp.sqrt(var + BN_EPS)
    return y * bn_gamma[None, :, None] + bn_beta[None, :, None]


def _run_case(key, B, Cin, Cout, N):
    kx, kw, kb = jax.random.split(key, 3)
    x = jax.random.normal(kx, (B, Cin, N), dtype=jnp.float32)
    bound = 1.0 / (Cin ** 0.5)
    conv_w = jax.random.uniform(kw, (Cout, Cin, 1), jnp.float32, -bound, bound)
    conv_b = jax.random.uniform(kb, (Cout,), jnp.float32, -bound, bound)
    bn_gamma = jnp.ones((Cout,), jnp.float32)
    bn_beta = jnp.zeros((Cout,), jnp.float32)

    out = jax.block_until_ready(shared_mlp(x, conv_w, conv_b, bn_gamma, bn_beta))
    ref = shared_mlp_reference(x, conv_w, conv_b, bn_gamma, bn_beta)
    assert out.shape == (B, Cout, N)
    assert jnp.allclose(out, ref, atol=1e-4, rtol=1e-4), "mismatch vs reference"


if __name__ == "__main__":
    key = jax.random.PRNGKey(0)
    k1, k2 = jax.random.split(key)

    # Small shape matching the module spec (B=2, in_dim=4, out_dim=8, N=16).
    _run_case(k1, B=2, Cin=4, Cout=8, N=16)
    # Slightly larger shape that exercises the tiled / multi-block stats path.
    _run_case(k2, B=3, Cin=6, Cout=16, N=384)

    print("KERNEL_OK")
</pallas_src>

<mosaic_0001>
module attributes {stable_mosaic.version = 11 : i64} {
  func.func @_stats_kernel(%arg0: i32, %arg1: i32, %arg2: memref<1x4x16xf32, #tpu.memory_space<vmem>>, %arg3: memref<8x4xf32, #tpu.memory_space<vmem>>, %arg4: memref<8x1xf32, #tpu.memory_space<vmem>>, %arg5: memref<1x8x2xf32, #tpu.memory_space<vmem>>) attributes {dimension_semantics = [#tpu.dimension_semantics<parallel>, #tpu.dimension_semantics<arbitrary>], iteration_bounds = array<i64: 2, 1>, scalar_prefetch = 0 : i64, scratch_operands = 0 : i64, tpu.core_type = #tpu.core_type<tc>, window_params = [{transform_indices = @transform_0, window_bounds = array<i64: 1, 4, 16>}, {pipeline_mode = #tpu.pipeline_mode<synchronous>, transform_indices = @transform_1, window_bounds = array<i64: 8, 4>}, {pipeline_mode = #tpu.pipeline_mode<synchronous>, transform_indices = @transform_2, window_bounds = array<i64: 8, 1>}, {transform_indices = @transform_3, window_bounds = array<i64: 1, 8, 2>}]} {
    %c0_i32 = arith.constant 0 : i32
    %0 = arith.cmpi eq, %arg1, %c0_i32 : i32
    %1 = arith.extui %0 : i1 to i32
    %c0_i32_0 = arith.constant 0 : i32
    %2 = arith.cmpi ne, %1, %c0_i32_0 : i32
    scf.if %2 {
      %cst_21 = arith.constant 0.000000e+00 : f32
      %29 = vector.broadcast %cst_21 : f32 to vector<8x2xf32>
      %c0_22 = arith.constant 0 : index
      %c0_23 = arith.constant 0 : index
      %c0_24 = arith.constant 0 : index
      %30 = vector.load %arg5[%c0_22, %c0_23, %c0_24] : memref<1x8x2xf32, #tpu.memory_space<vmem>>, vector<1x8x2xf32>
      %31 = vector.shape_cast %30 : vector<1x8x2xf32> to vector<8x2xf32>
      %32 = vector.shape_cast %29 : vector<8x2xf32> to vector<1x8x2xf32>
      tpu.vector_store %arg5[%c0_22, %c0_23, %c0_24], %32 {strides = array<i32>} : memref<1x8x2xf32, #tpu.memory_space<vmem>>, vector<1x8x2xf32>,
    } else {
    }
    %c0 = arith.constant 0 : index
    %c0_1 = arith.constant 0 : index
    %3 = vector.load %arg3[%c0, %c0_1] : memref<8x4xf32, #tpu.memory_space<vmem>>, vector<8x4xf32>
    %c0_2 = arith.constant 0 : index
    %c0_3 = arith.constant 0 : index
    %c0_4 = arith.constant 0 : index
    %4 = vector.load %arg2[%c0_2, %c0_3, %c0_4] : memref<1x4x16xf32, #tpu.memory_space<vmem>>, vector<1x4x16xf32>
    %5 = vector.shape_cast %4 : vector<1x4x16xf32> to vector<4x16xf32>
    %cst = arith.constant dense<0.000000e+00> : vector<8x16xf32>
    %6 = tpu.matmul %3, %5, %cst {dimension_numbers = #tpu.dot_dimension_numbers<[1], [0], [0], [1], [0, 0, 1, 1], [], []>} : vector<8x4xf32>, vector<4x16xf32>, vector<8x16xf32> -> vector<8x16xf32>
    %c0_5 = arith.constant 0 : index
    %c0_6 = arith.constant 0 : index
    %7 = vector.load %arg4[%c0_5, %c0_6] : memref<8x1xf32, #tpu.memory_space<vmem>>, vector<8x1xf32>
    %8 = vector.broadcast %7 : vector<8x1xf32> to vector<8x16xf32>
    %9 = arith.addf %6, %8 : vector<8x16xf32>
    %cst_7 = arith.constant 0.000000e+00 : f32
    %10 = vector.broadcast %cst_7 : f32 to vector<8x16xf32>
    %11 = arith.maximumf %9, %10 : vector<8x16xf32>
    %c0_8 = arith.constant 0 : index
    %c0_9 = arith.constant 0 : index
    %c0_10 = arith.constant 0 : index
    %12 = vector.load %arg5[%c0_8, %c0_9, %c0_10] : memref<1x8x2xf32, #tpu.memory_space<vmem>>, vector<1x8x1xf32>
    %13 = vector.shape_cast %12 : vector<1x8x1xf32> to vector<8x1xf32>
    %cst_11 = arith.constant dense<0.000000e+00> : vector<8xf32>
    %14 = vector.multi_reduction <add>, %11, %cst_11 [1] : vector<8x16xf32> to vector<8xf32>
    %15 = vector.shape_cast %14 : vector<8xf32> to vector<8x1xf32>
    %16 = arith.addf %13, %15 : vector<8x1xf32>
    %c0_12 = arith.constant 0 : index
    %c0_13 = arith.constant 0 : index
    %c0_14 = arith.constant 0 : index
    %17 = vector.load %arg5[%c0_12, %c0_13, %c0_14] : memref<1x8x2xf32, #tpu.memory_space<vmem>>, vector<1x8x1xf32>
    %18 = vector.shape_cast %17 : vector<1x8x1xf32> to vector<8x1xf32>
    %19 = vector.shape_cast %16 : vector<8x1xf32> to vector<1x8x1xf32>
    tpu.vector_store %arg5[%c0_12, %c0_13, %c0_14], %19 {strides = array<i32>} : memref<1x8x2xf32, #tpu.memory_space<vmem>>, vector<1x8x1xf32>,
    %c0_15 = arith.constant 0 : index
    %c0_16 = arith.constant 0 : index
    %c1 = arith.constant 1 : index
    %20 = vector.load %arg5[%c0_15, %c0_16, %c1] : memref<1x8x2xf32, #tpu.memory_space<vmem>>, vector<1x8x1xf32>
    %21 = vector.shape_cast %20 : vector<1x8x1xf32> to vector<8x1xf32>
    %22 = arith.mulf %11, %11 : vector<8x16xf32>
    %cst_17 = arith.constant dense<0.000000e+00> : vector<8xf32>
    %23 = vector.multi_reduction <add>, %22, %cst_17 [1] : vector<8x16xf32> to vector<8xf32>
    %24 = vector.shape_cast %23 : vector<8xf32> to vector<8x1xf32>
    %25 = arith.addf %21, %24 : vector<8x1xf32>
    %c0_18 = arith.constant 0 : index
    %c0_19 = arith.constant 0 : index
    %c1_20 = arith.constant 1 : index
    %26 = vector.load %arg5[%c0_18, %c0_19, %c1_20] : memref<1x8x2xf32, #tpu.memory_space<vmem>>, vector<1x8x1xf32>
    %27 = vector.shape_cast %26 : vector<1x8x1xf32> to vector<8x1xf32>
    %28 = vector.shape_cast %25 : vector<8x1xf32> to vector<1x8x1xf32>
    tpu.vector_store %arg5[%c0_18, %c0_19, %c1_20], %28 {strides = array<i32>} : memref<1x8x2xf32, #tpu.memory_space<vmem>>, vector<1x8x1xf32>,
    return
  }
  func.func @transform_0(%arg0: i32, %arg1: i32) -> (i32, i32, i32) {
    %c0_i32 = arith.constant 0 : i32
    %c0_i32_0 = arith.constant 0 : i32
    return %arg0, %c0_i32, %arg1 : i32, i32, i32
  }
  func.func @transform_1(%arg0: i32, %arg1: i32) -> (i32, i32) {
    %c0_i32 = arith.constant 0 : i32
    %c0_i32_0 = arith.constant 0 : i32
    %c0_i32_1 = arith.constant 0 : i32
    return %c0_i32, %c0_i32_0 : i32, i32
  }
  func.func @transform_2(%arg0: i32, %arg1: i32) -> (i32, i32) {
    %c0_i32 = arith.constant 0 : i32
    %c0_i32_0 = arith.constant 0 : i32
    %c0_i32_1 = arith.constant 0 : i32
    return %c0_i32, %c0_i32_0 : i32, i32
  }
  func.func @transform_3(%arg0: i32, %arg1: i32) -> (i32, i32, i32) {
    %c0_i32 = arith.constant 0 : i32
    %c0_i32_0 = arith.constant 0 : i32
    %c0_i32_1 = arith.constant 0 : i32
    return %arg0, %c0_i32, %c0_i32_0 : i32, i32, i32
  }
}

</mosaic_0001>

<bundles_post_ra>
// kernel: tpu_custom_call.1
= control target key start
LH: loop header
LB: loop body
LE: loop exit
PB: predicated region body
PF: predicated region fallthrough
CT: control target
= control target key end

     0   :  { %s396_s12 = smov 0   ;;  %s398_s13 = smov 0   ;;  %s435_s0 = inlined_call_operand.vmem [shape: f32[2,4,16], index: 0, kind: input, shape index: {}]   ;;  %s436_s1 = inlined_call_operand.vmem [shape: f32[8,4], index: 1, kind: input, shape index: {}]   ;;  %s437_s2 = inlined_call_operand.vmem [shape: f32[8,1], index: 2, kind: input, shape index: {}]   ;;  %s438_s3 = inlined_call_operand.vmem [shape: f32[2,8,2], index: 3, kind: output, shape index: {}]  }
   0x1   :  { %s400_s14 = smov 0  }
   0x2 LB: > { %s25_s15 = sadd.s32 1, %s368_s13  ;;  %p316_p0 = scmp.ge.s32.totalorder %s372_s14, 1  ;;  %s372_s14 = sphi %s400_s14, %s13_s14   ;;  %s368_s13 = sphi %s398_s13, %s440_s13   ;;  %s364_s12 = sphi %s396_s12, %s439_s12  }
   0x3   : > { %p27_p1 = scmp.ge.s32.totalorder %s25_s15, 2  ;;  %p153_p2 = scmp.lt.s32.totalorder %s372_s14, 3 }
   0x5   : > { %s442_s15 = smov (%p27_p1, %s25_s15), 0  ;;  %p154_p3 = pnand %p316_p0, %p153_p2 }
   0x6   : > { %p178_p4 = scmp.lt.s32.totalorder (!%p154_p3), %s364_s12, 1 }
   0x7   : > { %157 = sbr.rel (%p154_p3) target bundleno = 277 (0x115), region = 32 }
   0xc   : > { %v197_v0 = vld [vmem:[%s437_s2] sm:$0xff]  ;;  %s444_s12 = smov (!%p178_p4, %s364_s12), 1  ;;  %v374_v1 = vmov 0   ;;  %vm193_vm0 = vcmask 15360   ;;  %vm207_vm1 = vcmask 1043456   ;;  %vm203_vm2 = vcmask 31744  }
   0xd   : > { %349 = vset.pattern.permute.xlu0 %v374_v1  ;;  %s317_s18 = sshll.u32 %s444_s12, 2  ;;  %s318_s19 = sshll.u32 %s444_s12, 3  ;;  %v195_v2 = vld [vmem:[%s436_s1] sm:$0xff]  ;;  %v375_v3 = vmov 0.0   ;;  %vm233_vm3 = vcmask 130048   ;;  %vm238_vm4 = vcmask 7168  }
   0xe   : > { %200 = vperm.xlu0 %349, %v197_v0   ;;  %s184_s22 = scalar_lea.vmem %s435_s0, %s317_s18  ;;  %s188_s25 = scalar_lea.vmem %s438_s3, %s318_s19  ;;  %vm246_vm5 = vcmask 15368  }
   0xf   : > { %194 = vst.msk [vmem:[%s188_s25] sm:$0xff] %vm193_vm0, %v375_v3  ;;  %v196_v4 = vld [vmem:[%s184_s22] sm:$0xf] }
  0x10   : > { %319 = vmatpush.msk.msra.mxu0 %vm207_vm1, %v196_v4 }
  0x11   : > { %320 = vmatmul.msk.f32.vlgmr.msra.gmra.mxu0 %vm203_vm2, %v195_v2 }
  0x16   : > { %v232_v12 = vld [vmem:[%s188_s25] sm:$0xff] }
  0x80   : > { %v201_v5 = vpop.permute.xlu0 %200 }
  0x8e   : > { %v228_v6 = vpop.f32.mrf.mxu0 }
  0x8f   : > { %v229_v7 = vadd.f32 %v228_v6, %v201_v5 }
  0x91   : > { %v231_v8 = vmax.f32 %v229_v7, 0.0 }
  0x93   : > { %v234_v9 = vsel %vm233_vm3, %v231_v8, 0.0  ;;  %v241_v10 = vmul.f32 %v231_v8, %v231_v8 }
  0x94   : > { %235 = vadd.xlane.f32.xlu0 %v234_v9 }
  0x95   : > { %v242_v11 = vsel %vm233_vm3, %v241_v10, 0.0 }
  0x96   : > { %243 = vadd.xlane.f32.xlu1 %v242_v11 }
 0x107   : > { %v236_v13 = vpop.xlane.xlu0 %235 }
 0x108   : > { %v237_v14 = vadd.f32 %v236_v13, %v232_v12 }
 0x109   : > { %v244_v15 = vpop.xlane.xlu1 %243 }
 0x10a   : > { %239 = vst.msk [vmem:[%s188_s25] sm:$0xff] %vm238_vm4, %v237_v14 }
 0x111   : > { %v240_v16 = vld [vmem:[%s188_s25] sm:$0xff] }
 0x112   : > { %v245_v17 = vadd.f32 %v244_v15, %v240_v16 }
 0x114   : > { %247 = vst.msk [vmem:[%s188_s25] sm:$0xff] %vm246_vm5, %v245_v17 }
 0x115 PF: > { %s13_s14 = sadd.s32 1, %s372_s14   ;;  %s439_s12 = smov %s368_s13 }
 0x116   : > { %p10_p5 = scmp.ge.s32.totalorder %s13_s14, 4   ;;  %s440_s13 = smov %s442_s15 }
 0x118   :  { %12 = sbr.rel (!%p10_p5) target bundleno = 2 (0x2), region = 66 }

</bundles_post_ra>
